<compile_context>
chip_gen: v7x
topology: tpu7x:2x2x1
jax: 0.10.0
libtpu: 0.0.40
codegen_flags: <defaults>
</compile_context>

<pallas_src>
import functools

import jax
import jax.numpy as jnp
from jax.experimental import pallas as pl
from jax.experimental.pallas import tpu as pltpu


def _round_up(x, m):
    return (x + m - 1) // m * m


def _linear_kernel(x_ref, w_ref, b_ref, o_ref):
    """One (tm, Np) output tile; o_ref is the f32 accumulator (resident over K)."""
    k = pl.program_id(1)  # grid = (M, K); K innermost reduction axis

    @pl.when(k == 0)
    def _():
        # Initialize the resident output tile with the broadcast bias.
        o_ref[...] = jnp.broadcast_to(b_ref[...], o_ref.shape)

    o_ref[...] += jnp.dot(
        x_ref[...], w_ref[...], preferred_element_type=jnp.float32
    )


@functools.partial(jax.jit, static_argnames=("tk_max", "tm_max"))
def linear_forward(x, weight, bias, tk_max=8192, tm_max=128):
    """y = flatten(x) @ weight + bias  via a Pallas TPU kernel.

    x:      (B, C, H, W) -> flattened per-batch to (B, K)   (same as torch .view(B,-1))
    weight: (K, N),  bias: (N,)
    """
    B = x.shape[0]
    x2d = x.reshape(B, -1).astype(jnp.float32)
    K, N = weight.shape
    assert x2d.shape[1] == K

    # Lane-dense class axis: pad N to a multiple of 128 (zero cols/bias don't change valid cols).
    Np = _round_up(N, 128)
    # Sublane-dense batch axis: pad B to a multiple of 8; tile at <= tm_max for large batches.
    tm = min(_round_up(B, 8), tm_max)
    Bp = _round_up(B, tm)
    # Large K tile (capped so double-buffered weight tile stays well inside VMEM on v7x).
    tk = min(_round_up(K, 128), tk_max)
    Kp = _round_up(K, tk)

    x_p = jnp.zeros((Bp, Kp), jnp.float32).at[:B, :K].set(x2d)
    w_p = jnp.zeros((Kp, Np), jnp.float32).at[:K, :N].set(weight.astype(jnp.float32))
    b_p = jnp.zeros((1, Np), jnp.float32).at[0, :N].set(bias.astype(jnp.float32))

    n_m = Bp // tm
    n_k = Kp // tk

    out = pl.pallas_call(
        _linear_kernel,
        out_shape=jax.ShapeDtypeStruct((Bp, Np), jnp.float32),
        grid_spec=pltpu.PrefetchScalarGridSpec(
            num_scalar_prefetch=0,
            grid=(n_m, n_k),  # K (reduction) innermost
            in_specs=[
                pl.BlockSpec((tm, tk), lambda m, k: (m, k)),   # activation tile
                pl.BlockSpec((tk, Np), lambda m, k: (k, 0)),   # weight tile (lane-dense)
                pl.BlockSpec((1, Np), lambda m, k: (0, 0)),    # bias (resident)
            ],
            out_specs=pl.BlockSpec((tm, Np), lambda m, k: (m, 0)),
        ),
        compiler_params=pltpu.CompilerParams(
            dimension_semantics=("parallel", "arbitrary"),  # M parallel (v7x 2 TCs), K reduction
        ),
    )(x_p, w_p, b_p)

    return out[:B, :N]


def _cross_entropy(logits, labels):
    """Mean softmax cross-entropy, identical to F.cross_entropy(logits, labels)."""
    logits = logits.astype(jnp.float32)
    m = jnp.max(logits, axis=-1, keepdims=True)
    lse = m[:, 0] + jnp.log(jnp.sum(jnp.exp(logits - m), axis=-1))
    true_logit = jnp.take_along_axis(logits, labels[:, None], axis=-1)[:, 0]
    return jnp.mean(lse - true_logit)


def logistic_distill_forward(x, y, weight, bias, *, reg=1.0, is_linear=False,
                             upper_reg=None, with_bias=False, with_acc=True):
    """Full LogisticDistill.forward (upper/is_lower=False path)."""
    logits = linear_forward(x, weight, bias)          # Pallas kernel
    y = y.astype(jnp.int32)
    loss = _cross_entropy(logits, y)
    if reg > 0.0:
        if is_linear:
            # reg_term_linear: 0.5 * mean(W^2 * exp(upper_reg.unsqueeze(1) * ones_dxc))
            reg_term = 0.5 * jnp.mean(weight.astype(jnp.float32) ** 2
                                      * jnp.exp(upper_reg.astype(jnp.float32)[:, None]))
        else:
            # reg_term: sum of squares over lower-model parameters
            reg_term = jnp.sum(weight.astype(jnp.float32) ** 2)
            if with_bias:
                reg_term = reg_term + jnp.sum(bias.astype(jnp.float32) ** 2)
        loss = loss + reg * reg_term
    if with_acc:
        pred = jnp.argmax(logits, axis=1)
        acc = jnp.mean((pred == y).astype(jnp.float32))
        return loss, acc, logits
    return loss, None, logits


if __name__ == "__main__":
    # Small shapes consistent with the module: image-like input flattened to features.
    B, C, H, W = 2, 4, 16, 16
    n_features = C * H * W          # 1024
    n_classes = 10
    with_bias = False               # torch Linear default in this repo
    reg = 1.0

    key = jax.random.PRNGKey(0)
    kx, kw, ky, kr = jax.random.split(key, 4)

    x = jax.random.normal(kx, (B, C, H, W), dtype=jnp.float32)
    y = jax.random.randint(ky, (B,), 0, n_classes)
    # Deterministic small-random params (torch init is zeros; forward semantics identical).
    weight = jax.random.normal(kw, (n_features, n_classes), dtype=jnp.float32) * 0.02
    bias = jnp.zeros((n_classes,), dtype=jnp.float32)        # with_bias=False -> bias = 0.0
    upper_reg = jax.random.normal(kr, (n_features,), dtype=jnp.float32) * 0.1

    # --- run (default reg_term path) ---
    loss, acc, logits = logistic_distill_forward(
        x, y, weight, bias, reg=reg, is_linear=False,
        upper_reg=upper_reg, with_bias=with_bias, with_acc=True)
    loss = jax.block_until_ready(loss)

    # --- plain-JAX reference (matches the torch module) ---
    logits_ref = x.reshape(B, -1) @ weight + bias
    m = jnp.max(logits_ref, axis=-1, keepdims=True)
    lse = m[:, 0] + jnp.log(jnp.sum(jnp.exp(logits_ref - m), axis=-1))
    ce_ref = jnp.mean(lse - jnp.take_along_axis(logits_ref, y[:, None], axis=-1)[:, 0])
    loss_ref = ce_ref + reg * jnp.sum(weight ** 2)
    acc_ref = jnp.mean((jnp.argmax(logits_ref, axis=1) == y).astype(jnp.float32))

    assert logits.shape == (B, n_classes)
    assert jnp.allclose(logits, logits_ref, atol=1e-5, rtol=1e-5), "logits mismatch"
    assert jnp.allclose(loss, loss_ref, atol=1e-4, rtol=1e-4), "loss mismatch"
    assert jnp.allclose(acc, acc_ref), "acc mismatch"

    # --- also exercise the is_linear reg path ---
    loss_lin, _, _ = logistic_distill_forward(
        x, y, weight, bias, reg=reg, is_linear=True,
        upper_reg=upper_reg, with_bias=with_bias, with_acc=False)
    loss_lin = jax.block_until_ready(loss_lin)
    loss_lin_ref = ce_ref + reg * 0.5 * jnp.mean(weight ** 2 * jnp.exp(upper_reg[:, None]))
    assert jnp.allclose(loss_lin, loss_lin_ref, atol=1e-4, rtol=1e-4), "linear-reg loss mismatch"

    print("KERNEL_OK")
</pallas_src>

<mosaic_0001>
module attributes {stable_mosaic.version = 11 : i64} {
  func.func @_linear_kernel(%arg0: i32, %arg1: i32, %arg2: memref<8x1024xf32, #tpu.memory_space<vmem>>, %arg3: memref<1024x128xf32, #tpu.memory_space<vmem>>, %arg4: memref<1x128xf32, #tpu.memory_space<vmem>>, %arg5: memref<8x128xf32, #tpu.memory_space<vmem>>) attributes {dimension_semantics = [#tpu.dimension_semantics<parallel>, #tpu.dimension_semantics<arbitrary>], iteration_bounds = array<i64: 1, 1>, scalar_prefetch = 0 : i64, scratch_operands = 0 : i64, tpu.core_type = #tpu.core_type<tc>, window_params = [{transform_indices = @transform_0, window_bounds = array<i64: 8, 1024>}, {transform_indices = @transform_1, window_bounds = array<i64: 1024, 128>}, {pipeline_mode = #tpu.pipeline_mode<synchronous>, transform_indices = @transform_2, window_bounds = array<i64: 1, 128>}, {transform_indices = @transform_3, window_bounds = array<i64: 8, 128>}]} {
    %c0_i32 = arith.constant 0 : i32
    %0 = arith.cmpi eq, %arg1, %c0_i32 : i32
    %1 = arith.extui %0 : i1 to i32
    %c0_i32_0 = arith.constant 0 : i32
    %2 = arith.cmpi ne, %1, %c0_i32_0 : i32
    scf.if %2 {
      %c0_8 = arith.constant 0 : index
      %c0_9 = arith.constant 0 : index
      %9 = vector.load %arg4[%c0_8, %c0_9] : memref<1x128xf32, #tpu.memory_space<vmem>>, vector<1x128xf32>
      %10 = vector.shape_cast %9 : vector<1x128xf32> to vector<1x128xf32>
      %11 = vector.broadcast %10 : vector<1x128xf32> to vector<8x128xf32>
      %c0_10 = arith.constant 0 : index
      %c0_11 = arith.constant 0 : index
      %12 = vector.load %arg5[%c0_10, %c0_11] : memref<8x128xf32, #tpu.memory_space<vmem>>, vector<8x128xf32>
      tpu.vector_store %arg5[%c0_10, %c0_11], %11 {strides = array<i32>} : memref<8x128xf32, #tpu.memory_space<vmem>>, vector<8x128xf32>,
    } else {
    }
    %c0 = arith.constant 0 : index
    %c0_1 = arith.constant 0 : index
    %3 = vector.load %arg5[%c0, %c0_1] : memref<8x128xf32, #tpu.memory_space<vmem>>, vector<8x128xf32>
    %c0_2 = arith.constant 0 : index
    %c0_3 = arith.constant 0 : index
    %4 = vector.load %arg2[%c0_2, %c0_3] : memref<8x1024xf32, #tpu.memory_space<vmem>>, vector<8x1024xf32>
    %c0_4 = arith.constant 0 : index
    %c0_5 = arith.constant 0 : index
    %5 = vector.load %arg3[%c0_4, %c0_5] : memref<1024x128xf32, #tpu.memory_space<vmem>>, vector<1024x128xf32>
    %cst = arith.constant dense<0.000000e+00> : vector<8x128xf32>
    %6 = tpu.matmul %4, %5, %cst {dimension_numbers = #tpu.dot_dimension_numbers<[1], [0], [0], [1], [0, 0, 1, 1], [], []>} : vector<8x1024xf32>, vector<1024x128xf32>, vector<8x128xf32> -> vector<8x128xf32>
    %7 = arith.addf %3, %6 : vector<8x128xf32>
    %c0_6 = arith.constant 0 : index
    %c0_7 = arith.constant 0 : index
    %8 = vector.load %arg5[%c0_6, %c0_7] : memref<8x128xf32, #tpu.memory_space<vmem>>, vector<8x128xf32>
    tpu.vector_store %arg5[%c0_6, %c0_7], %7 {strides = array<i32>} : memref<8x128xf32, #tpu.memory_space<vmem>>, vector<8x128xf32>,
    return
  }
  func.func @transform_0(%arg0: i32, %arg1: i32) -> (i32, i32) {
    %c0_i32 = arith.constant 0 : i32
    return %arg0, %arg1 : i32, i32
  }
  func.func @transform_1(%arg0: i32, %arg1: i32) -> (i32, i32) {
    %c0_i32 = arith.constant 0 : i32
    %c0_i32_0 = arith.constant 0 : i32
    return %arg1, %c0_i32 : i32, i32
  }
  func.func @transform_2(%arg0: i32, %arg1: i32) -> (i32, i32) {
    %c0_i32 = arith.constant 0 : i32
    %c0_i32_0 = arith.constant 0 : i32
    %c0_i32_1 = arith.constant 0 : i32
    return %c0_i32, %c0_i32_0 : i32, i32
  }
  func.func @transform_3(%arg0: i32, %arg1: i32) -> (i32, i32) {
    %c0_i32 = arith.constant 0 : i32
    %c0_i32_0 = arith.constant 0 : i32
    return %arg0, %c0_i32 : i32, i32
  }
}

</mosaic_0001>

<bundles_post_ra>
// kernel: linear_forward.1
= control target key start
LH: loop header
LB: loop body
LE: loop exit
PB: predicated region body
PF: predicated region fallthrough
CT: control target
= control target key end

     0   :  { %s1152_s1 = inlined_call_operand.vmem [shape: f32[1024,128], index: 1, kind: input, shape index: {}]   ;;  %s1153_s0 = inlined_call_operand.vmem [shape: f32[8,1024], index: 0, kind: input, shape index: {}]   ;;  %s1154_s2 = inlined_call_operand.vmem [shape: f32[1,128], index: 2, kind: input, shape index: {}]   ;;  %s1155_s3 = inlined_call_operand.vmem [shape: f32[8,128], index: 3, kind: output, shape index: {}]  }
   0x1   :  { %v51_v0 = vld [vmem:[%s1152_s1 + $0x80] sm:$0xff]  ;;  %v52_v1 = vld [vmem:[%s1152_s1 + $0x88] sm:$0xff]  ;;  %v53_v11 = vld [vmem:[%s1152_s1 + $0x90] sm:$0xff] }
   0x2   :  { %v83_v2 = vld [vmem:[%s1152_s1 + $0x180] sm:$0xff]  ;;  %v590_v3 = vpack.c.bf16 %v52_v1, %v51_v0  ;;  %v84_v4 = vld [vmem:[%s1152_s1 + $0x188] sm:$0xff]  ;;  %v54_v13 = vld [vmem:[%s1152_s1 + $0x98] sm:$0xff] }
   0x3   :  { %v35_v5 = vld [vmem:[%s1152_s1] sm:$0xff]  ;;  %v36_v6 = vld [vmem:[%s1152_s1 + $0x8] sm:$0xff]  ;;  %v622_v7 = vpack.c.bf16 %v84_v4, %v83_v2  ;;  %v85_v14 = vld [vmem:[%s1152_s1 + $0x190] sm:$0xff]  ;;  %v594_v16 = vpack.c.bf16 %v54_v13, %v53_v11 }
   0x4   :  { %v592_v8 = vpack.c.bf16 %v36_v6, %v35_v5  ;;  %v67_v9 = vld [vmem:[%s1152_s1 + $0x100] sm:$0xff]  ;;  %v68_v10 = vld [vmem:[%s1152_s1 + $0x108] sm:$0xff]  ;;  %591 = vmatprep.subr.bf16.mxu0 %v590_v3  ;;  %v86_v15 = vld [vmem:[%s1152_s1 + $0x198] sm:$0xff] }
   0x5   :  { %v624_v12 = vpack.c.bf16 %v68_v10, %v67_v9  ;;  %623 = vmatprep.subr.bf16.mxu1 %v622_v7  ;;  %v626_v17 = vpack.c.bf16 %v86_v15, %v85_v14  ;;  %v37_v18 = vld [vmem:[%s1152_s1 + $0x10] sm:$0xff]  ;;  %v38_v19 = vld [vmem:[%s1152_s1 + $0x18] sm:$0xff]  ;;  %v55_v23 = vld [vmem:[%s1152_s1 + $0xa0] sm:$0xff] }
   0x6   :  { %593 = vmatpush3.bf16.msra.mxu0 %v592_v8  ;;  %v69_v20 = vld [vmem:[%s1152_s1 + $0x110] sm:$0xff]  ;;  %v596_v21 = vpack.c.bf16 %v38_v19, %v37_v18  ;;  %v70_v22 = vld [vmem:[%s1152_s1 + $0x118] sm:$0xff]  ;;  %v56_v24 = vld [vmem:[%s1152_s1 + $0xa8] sm:$0xff] }
   0x7   :  { %625 = vmatpush3.bf16.msra.mxu1 %v624_v12  ;;  %595 = vmatprep.subr.bf16.mxu0 %v594_v16  ;;  %v628_v25 = vpack.c.bf16 %v70_v22, %v69_v20  ;;  %v598_v26 = vpack.c.bf16 %v56_v24, %v55_v23  ;;  %v87_v27 = vld [vmem:[%s1152_s1 + $0x1a0] sm:$0xff]  ;;  %v88_v28 = vld [vmem:[%s1152_s1 + $0x1a8] sm:$0xff]  ;;  %v57_v35 = vld [vmem:[%s1152_s1 + $0xb0] sm:$0xff] }
   0x8   :  { %627 = vmatprep.subr.bf16.mxu1 %v626_v17  ;;  %v39_v29 = vld [vmem:[%s1152_s1 + $0x20] sm:$0xff]  ;;  %v630_v30 = vpack.c.bf16 %v88_v28, %v87_v27  ;;  %v40_v31 = vld [vmem:[%s1152_s1 + $0x28] sm:$0xff]  ;;  %v58_v36 = vld [vmem:[%s1152_s1 + $0xb8] sm:$0xff] }
   0x9   :  { %v71_v32 = vld [vmem:[%s1152_s1 + $0x120] sm:$0xff]  ;;  %v72_v33 = vld [vmem:[%s1152_s1 + $0x128] sm:$0xff]  ;;  %v600_v34 = vpack.c.bf16 %v40_v31, %v39_v29  ;;  %v89_v37 = vld [vmem:[%s1152_s1 + $0x1b0] sm:$0xff]  ;;  %v602_v39 = vpack.c.bf16 %v58_v36, %v57_v35 }
   0xa   :  { %597 = vmatpush3.bf16.msra.mxu0 %v596_v21  ;;  %v632_v38 = vpack.c.bf16 %v72_v33, %v71_v32  ;;  %v90_v40 = vld [vmem:[%s1152_s1 + $0x1b8] sm:$0xff]  ;;  %v41_v41 = vld [vmem:[%s1152_s1 + $0x30] sm:$0xff]  ;;  %v59_v46 = vld [vmem:[%s1152_s1 + $0xc0] sm:$0xff] }
   0xb   :  { %629 = vmatpush3.bf16.msra.mxu1 %v628_v25  ;;  %599 = vmatprep.subr.bf16.mxu0 %v598_v26  ;;  %v42_v42 = vld [vmem:[%s1152_s1 + $0x38] sm:$0xff]  ;;  %v634_v43 = vpack.c.bf16 %v90_v40, %v89_v37  ;;  %v73_v44 = vld [vmem:[%s1152_s1 + $0x130] sm:$0xff]  ;;  %v60_v47 = vld [vmem:[%s1152_s1 + $0xc8] sm:$0xff] }
   0xc   :  { %631 = vmatprep.subr.bf16.mxu1 %v630_v30  ;;  %v74_v45 = vld [vmem:[%s1152_s1 + $0x138] sm:$0xff]  ;;  %v91_v48 = vld [vmem:[%s1152_s1 + $0x1c0] sm:$0xff]  ;;  %v92_v49 = vld [vmem:[%s1152_s1 + $0x1c8] sm:$0xff]  ;;  %v604_v50 = vpack.c.bf16 %v42_v42, %v41_v41  ;;  %v606_v52 = vpack.c.bf16 %v60_v47, %v59_v46 }
   0xd   :  { %v636_v51 = vpack.c.bf16 %v74_v45, %v73_v44  ;;  %v43_v53 = vld [vmem:[%s1152_s1 + $0x40] sm:$0xff]  ;;  %v44_v54 = vld [vmem:[%s1152_s1 + $0x48] sm:$0xff]  ;;  %v638_v56 = vpack.c.bf16 %v92_v49, %v91_v48  ;;  %v61_v58 = vld [vmem:[%s1152_s1 + $0xd0] sm:$0xff] }
   0xe   :  { %601 = vmatpush3.bf16.msra.mxu0 %v600_v34  ;;  %v75_v55 = vld [vmem:[%s1152_s1 + $0x140] sm:$0xff]  ;;  %v76_v57 = vld [vmem:[%s1152_s1 + $0x148] sm:$0xff]  ;;  %v62_v59 = vld [vmem:[%s1152_s1 + $0xd8] sm:$0xff]  ;;  %v608_v62 = vpack.c.bf16 %v44_v54, %v43_v53 }
   0xf   :  { %633 = vmatpush3.bf16.msra.mxu1 %v632_v38  ;;  %603 = vmatprep.subr.bf16.mxu0 %v602_v39  ;;  %v93_v60 = vld [vmem:[%s1152_s1 + $0x1d0] sm:$0xff]  ;;  %v94_v61 = vld [vmem:[%s1152_s1 + $0x1d8] sm:$0xff]  ;;  %v640_v63 = vpack.c.bf16 %v76_v57, %v75_v55  ;;  %v610_v0 = vpack.c.bf16 %v62_v59, %v61_v58  ;;  %v63_v6 = vld [vmem:[%s1152_s1 + $0xe0] sm:$0xff] }
  0x10   :  { %635 = vmatprep.subr.bf16.mxu1 %v634_v43  ;;  %v45_v1 = vld [vmem:[%s1152_s1 + $0x50] sm:$0xff]  ;;  %v46_v2 = vld [vmem:[%s1152_s1 + $0x58] sm:$0xff]  ;;  %v642_v4 = vpack.c.bf16 %v94_v61, %v93_v60  ;;  %v64_v7 = vld [vmem:[%s1152_s1 + $0xe8] sm:$0xff] }
  0x11   :  { %v77_v3 = vld [vmem:[%s1152_s1 + $0x150] sm:$0xff]  ;;  %v78_v5 = vld [vmem:[%s1152_s1 + $0x158] sm:$0xff]  ;;  %v95_v8 = vld [vmem:[%s1152_s1 + $0x1e0] sm:$0xff]  ;;  %v612_v10 = vpack.c.bf16 %v46_v2, %v45_v1  ;;  %v614_v14 = vpack.c.bf16 %v64_v7, %v63_v6 }
  0x12   :  { %605 = vmatpush3.bf16.msra.mxu0 %v604_v50  ;;  %v96_v9 = vld [vmem:[%s1152_s1 + $0x1e8] sm:$0xff]  ;;  %v47_v11 = vld [vmem:[%s1152_s1 + $0x60] sm:$0xff]  ;;  %v644_v13 = vpack.c.bf16 %v78_v5, %v77_v3  ;;  %v30_v17 = vld [vmem:[%s1153_s0 + $0x18] sm:$0xff] }
  0x13   :  { %637 = vmatpush3.bf16.msra.mxu1 %v636_v51  ;;  %607 = vmatprep.subr.bf16.mxu0 %v606_v52  ;;  %v48_v12 = vld [vmem:[%s1152_s1 + $0x68] sm:$0xff]  ;;  %v79_v15 = vld [vmem:[%s1152_s1 + $0x160] sm:$0xff]  ;;  %v646_v18 = vpack.c.bf16 %v96_v9, %v95_v8  ;;  %v65_v20 = vld [vmem:[%s1152_s1 + $0xf0] sm:$0xff] }
  0x14   :  { %639 = vmatprep.subr.bf16.mxu1 %v638_v56  ;;  %v28_v16 = vld [vmem:[%s1153_s0 + $0x8] sm:$0xff]  ;;  %v66_v21 = vld [vmem:[%s1152_s1 + $0xf8] sm:$0xff]  ;;  %v97_v22 = vld [vmem:[%s1152_s1 + $0x1f0] sm:$0xff]  ;;  %297 = vmatprep.mubr.f32.mxu1 %v30_v17  ;;  %v616_v24 = vpack.c.bf16 %v48_v12, %v47_v11 }
  0x15   :  { %v80_v19 = vld [vmem:[%s1152_s1 + $0x168] sm:$0xff]  ;;  %227 = vmatprep.mubr.f32.mxu0 %v28_v16  ;;  %v98_v23 = vld [vmem:[%s1152_s1 + $0x1f8] sm:$0xff]  ;;  %v618_v26 = vpack.c.bf16 %v66_v21, %v65_v20  ;;  %v49_v27 = vld [vmem:[%s1152_s1 + $0x70] sm:$0xff] }
  0x16   :  { %609 = vmatpush3.bf16.msra.mxu0 %v608_v62  ;;  %v648_v25 = vpack.c.bf16 %v80_v19, %v79_v15  ;;  %v50_v28 = vld [vmem:[%s1152_s1 + $0x78] sm:$0xff]  ;;  %v81_v29 = vld [vmem:[%s1152_s1 + $0x170] sm:$0xff]  ;;  %v650_v30 = vpack.c.bf16 %v98_v23, %v97_v22  ;;  %v115_v32 = vld [vmem:[%s1152_s1 + $0x280] sm:$0xff] }
  0x17   :  { %641 = vmatpush3.bf16.msra.mxu1 %v640_v63  ;;  %611 = vmatprep.subr.bf16.mxu0 %v610_v0  ;;  %v82_v31 = vld [vmem:[%s1152_s1 + $0x178] sm:$0xff]  ;;  %v116_v33 = vld [vmem:[%s1152_s1 + $0x288] sm:$0xff]  ;;  %v147_v34 = vld [vmem:[%s1152_s1 + $0x380] sm:$0xff]  ;;  %v620_v36 = vpack.c.bf16 %v50_v28, %v49_v27 }
  0x18   :  { %643 = vmatprep.subr.bf16.mxu1 %v642_v4  ;;  %v148_v35 = vld [vmem:[%s1152_s1 + $0x388] sm:$0xff]  ;;  %v652_v37 = vpack.c.bf16 %v82_v31, %v81_v29  ;;  %v654_v38 = vpack.c.bf16 %v116_v33, %v115_v32  ;;  %v99_v39 = vld [vmem:[%s1152_s1 + $0x200] sm:$0xff]  ;;  %v117_v44 = vld [vmem:[%s1152_s1 + $0x290] sm:$0xff] }
  0x19   :  { %v100_v40 = vld [vmem:[%s1152_s1 + $0x208] sm:$0xff]  ;;  %v131_v41 = vld [vmem:[%s1152_s1 + $0x300] sm:$0xff]  ;;  %v686_v42 = vpack.c.bf16 %v148_v35, %v147_v34  ;;  %v118_v45 = vld [vmem:[%s1152_s1 + $0x298] sm:$0xff] }
  0x1a   :  { %613 = vmatpush3.bf16.msra.mxu0 %v612_v10  ;;  %v132_v43 = vld [vmem:[%s1152_s1 + $0x308] sm:$0xff]  ;;  %v149_v46 = vld [vmem:[%s1152_s1 + $0x390] sm:$0xff]  ;;  %v150_v47 = vld [vmem:[%s1152_s1 + $0x398] sm:$0xff]  ;;  %v656_v50 = vpack.c.bf16 %v100_v40, %v99_v39  ;;  %v658_v52 = vpack.c.bf16 %v118_v45, %v117_v44 }
  0x1b   :  { %645 = vmatpush3.bf16.msra.mxu1 %v644_v13  ;;  %615 = vmatprep.subr.bf16.mxu0 %v614_v14  ;;  %v27_v48 = vld [vmem:[%s1153_s0] sm:$0xff]  ;;  %v29_v49 = vld [vmem:[%s1153_s0 + $0x10] sm:$0xff]  ;;  %v688_v51 = vpack.c.bf16 %v132_v43, %v131_v41  ;;  %v102_v54 = vld [vmem:[%s1152_s1 + $0x218] sm:$0xff]  ;;  %v690_v56 = vpack.c.bf16 %v150_v47, %v149_v46 }
  0x1c   :  { %647 = vmatprep.subr.bf16.mxu1 %v646_v18  ;;  %v101_v53 = vld [vmem:[%s1152_s1 + $0x210] sm:$0xff]  ;;  %v134_v57 = vld [vmem:[%s1152_s1 + $0x318] sm:$0xff]  ;;  %v119_v58 = vld [vmem:[%s1152_s1 + $0x2a0] sm:$0xff] }
  0x1d   :  { %v133_v55 = vld [vmem:[%s1152_s1 + $0x310] sm:$0xff]  ;;  %v120_v59 = vld [vmem:[%s1152_s1 + $0x2a8] sm:$0xff]  ;;  %v151_v60 = vld [vmem:[%s1152_s1 + $0x3a0] sm:$0xff]  ;;  %v660_v62 = vpack.c.bf16 %v102_v54, %v101_v53 }
  0x1e   :  { %617 = vmatpush3.bf16.msra.mxu0 %v616_v24  ;;  %v152_v61 = vld [vmem:[%s1152_s1 + $0x3a8] sm:$0xff]  ;;  %v692_v63 = vpack.c.bf16 %v134_v57, %v133_v55  ;;  %v662_v0 = vpack.c.bf16 %v120_v59, %v119_v58  ;;  %v103_v1 = vld [vmem:[%s1152_s1 + $0x220] sm:$0xff]  ;;  %v121_v6 = vld [vmem:[%s1152_s1 + $0x2b0] sm:$0xff] }
  0x1f   :  { %649 = vmatpush3.bf16.msra.mxu1 %v648_v25  ;;  %619 = vmatprep.subr.bf16.mxu0 %v618_v26  ;;  %v104_v2 = vld [vmem:[%s1152_s1 + $0x228] sm:$0xff]  ;;  %v135_v3 = vld [vmem:[%s1152_s1 + $0x320] sm:$0xff]  ;;  %v694_v4 = vpack.c.bf16 %v152_v61, %v151_v60  ;;  %v122_v7 = vld [vmem:[%s1152_s1 + $0x2b8] sm:$0xff] }
  0x20   :  { %651 = vmatprep.subr.bf16.mxu1 %v650_v30  ;;  %v136_v5 = vld [vmem:[%s1152_s1 + $0x328] sm:$0xff]  ;;  %v153_v8 = vld [vmem:[%s1152_s1 + $0x3b0] sm:$0xff]  ;;  %v154_v9 = vld [vmem:[%s1152_s1 + $0x3b8] sm:$0xff]  ;;  %v664_v10 = vpack.c.bf16 %v104_v2, %v103_v1  ;;  %v666_v12 = vpack.c.bf16 %v122_v7, %v121_v6 }
  0x21   :  { %v696_v11 = vpack.c.bf16 %v136_v5, %v135_v3  ;;  %v105_v13 = vld [vmem:[%s1152_s1 + $0x230] sm:$0xff]  ;;  %v106_v14 = vld [vmem:[%s1152_s1 + $0x238] sm:$0xff]  ;;  %v698_v16 = vpack.c.bf16 %v154_v9, %v153_v8  ;;  %v123_v18 = vld [vmem:[%s1152_s1 + $0x2c0] sm:$0xff] }
  0x22   :  { %621 = vmatpush3.bf16.msra.mxu0 %v620_v36  ;;  %v137_v15 = vld [vmem:[%s1152_s1 + $0x330] sm:$0xff]  ;;  %v138_v17 = vld [vmem:[%s1152_s1 + $0x338] sm:$0xff]  ;;  %v124_v19 = vld [vmem:[%s1152_s1 + $0x2c8] sm:$0xff]  ;;  %v668_v22 = vpack.c.bf16 %v106_v14, %v105_v13 }
  0x23   :  { %653 = vmatpush3.bf16.msra.mxu1 %v652_v37  ;;  %655 = vmatprep.subr.bf16.mxu0 %v654_v38  ;;  %v155_v20 = vld [vmem:[%s1152_s1 + $0x3c0] sm:$0xff]  ;;  %v156_v21 = vld [vmem:[%s1152_s1 + $0x3c8] sm:$0xff]  ;;  %v34_v24 = vld [vmem:[%s1153_s0 + $0x38] sm:$0xff]  ;;  %v700_v25 = vpack.c.bf16 %v138_v17, %v137_v15  ;;  %v670_v26 = vpack.c.bf16 %v124_v19, %v123_v18 }
  0x24   :  { %687 = vmatprep.subr.bf16.mxu1 %v686_v42  ;;  %v32_v23 = vld [vmem:[%s1153_s0 + $0x28] sm:$0xff]  ;;  %v107_v27 = vld [vmem:[%s1152_s1 + $0x240] sm:$0xff]  ;;  %v702_v30 = vpack.c.bf16 %v156_v21, %v155_v20  ;;  %v125_v32 = vld [vmem:[%s1152_s1 + $0x2d0] sm:$0xff] }
  0x25   :  { %228 = vmatmul.mubr.f32.vlgmr.msra.gmra.mrb[0].mxu0 %v27_v48  ;;  %v108_v28 = vld [vmem:[%s1152_s1 + $0x248] sm:$0xff]  ;;  %v139_v29 = vld [vmem:[%s1152_s1 + $0x340] sm:$0xff]  ;;  %v126_v33 = vld [vmem:[%s1152_s1 + $0x2d8] sm:$0xff] }
  0x26   :  { %298 = vmatmul.mubr.f32.vlgmr.msra.gmra.mrb[0].mxu1 %v29_v49  ;;  %657 = vmatpush3.bf16.msra.mxu0 %v656_v50  ;;  %v140_v31 = vld [vmem:[%s1152_s1 + $0x348] sm:$0xff]  ;;  %v157_v34 = vld [vmem:[%s1152_s1 + $0x3d0] sm:$0xff]  ;;  %v158_v35 = vld [vmem:[%s1152_s1 + $0x3d8] sm:$0xff]  ;;  %v672_v36 = vpack.c.bf16 %v108_v28, %v107_v27  ;;  %v674_v38 = vpack.c.bf16 %v126_v33, %v125_v32 }
  0x27   :  { %689 = vmatpush3.bf16.msra.mxu1 %v688_v51  ;;  %659 = vmatprep.subr.bf16.mxu0 %v658_v52  ;;  %v704_v37 = vpack.c.bf16 %v140_v31, %v139_v29  ;;  %v109_v39 = vld [vmem:[%s1152_s1 + $0x250] sm:$0xff]  ;;  %v110_v40 = vld [vmem:[%s1152_s1 + $0x258] sm:$0xff]  ;;  %v706_v42 = vpack.c.bf16 %v158_v35, %v157_v34  ;;  %v127_v44 = vld [vmem:[%s1152_s1 + $0x2e0] sm:$0xff] }
  0x28   :  { %691 = vmatprep.subr.bf16.mxu1 %v690_v56  ;;  %367 = vmatprep.mubr.f32.mxu0 %v32_v23  ;;  %v141_v41 = vld [vmem:[%s1152_s1 + $0x350] sm:$0xff]  ;;  %v142_v43 = vld [vmem:[%s1152_s1 + $0x358] sm:$0xff]  ;;  %v128_v45 = vld [vmem:[%s1152_s1 + $0x2e8] sm:$0xff]  ;;  %v676_v48 = vpack.c.bf16 %v110_v40, %v109_v39 }
  0x29   :  { %437 = vmatprep.mubr.f32.mxu1 %v34_v24  ;;  %v159_v46 = vld [vmem:[%s1152_s1 + $0x3e0] sm:$0xff]  ;;  %v160_v47 = vld [vmem:[%s1152_s1 + $0x3e8] sm:$0xff]  ;;  %v708_v49 = vpack.c.bf16 %v142_v43, %v141_v41  ;;  %v678_v50 = vpack.c.bf16 %v128_v45, %v127_v44  ;;  %v129_v56 = vld [vmem:[%s1152_s1 + $0x2f0] sm:$0xff] }
  0x2a   :  { %661 = vmatpush3.bf16.msra.mxu0 %v660_v62  ;;  %v111_v51 = vld [vmem:[%s1152_s1 + $0x260] sm:$0xff]  ;;  %v112_v52 = vld [vmem:[%s1152_s1 + $0x268] sm:$0xff]  ;;  %v710_v54 = vpack.c.bf16 %v160_v47, %v159_v46  ;;  %v130_v57 = vld [vmem:[%s1152_s1 + $0x2f8] sm:$0xff] }
  0x2b   :  { %693 = vmatpush3.bf16.msra.mxu1 %v692_v63  ;;  %663 = vmatprep.subr.bf16.mxu0 %v662_v0  ;;  %v143_v53 = vld [vmem:[%s1152_s1 + $0x360] sm:$0xff]  ;;  %v144_v55 = vld [vmem:[%s1152_s1 + $0x368] sm:$0xff]  ;;  %v161_v58 = vld [vmem:[%s1152_s1 + $0x3f0] sm:$0xff]  ;;  %v680_v60 = vpack.c.bf16 %v112_v52, %v111_v51  ;;  %v682_v62 = vpack.c.bf16 %v130_v57, %v129_v56 }
  0x2c   :  { %695 = vmatprep.subr.bf16.mxu1 %v694_v4  ;;  %v162_v59 = vld [vmem:[%s1152_s1 + $0x3f8] sm:$0xff]  ;;  %v712_v61 = vpack.c.bf16 %v144_v55, %v143_v53  ;;  %v113_v63 = vld [vmem:[%s1152_s1 + $0x270] sm:$0xff]  ;;  %v31_v6 = vld [vmem:[%s1153_s0 + $0x20] sm:$0xff] }
  0x2d   :  { %v114_v0 = vld [vmem:[%s1152_s1 + $0x278] sm:$0xff]  ;;  %v714_v1 = vpack.c.bf16 %v162_v59, %v161_v58  ;;  %v145_v2 = vld [vmem:[%s1152_s1 + $0x370] sm:$0xff] }
  0x2e   :  { %665 = vmatpush3.bf16.msra.mxu0 %v664_v10  ;;  %v146_v3 = vld [vmem:[%s1152_s1 + $0x378] sm:$0xff]  ;;  %v684_v4 = vpack.c.bf16 %v114_v0, %v113_v63  ;;  %v33_v7 = vld [vmem:[%s1153_s0 + $0x30] sm:$0xff] }
  0x2f   :  { %697 = vmatpush3.bf16.msra.mxu1 %v696_v11  ;;  %667 = vmatprep.subr.bf16.mxu0 %v666_v12  ;;  %v716_v5 = vpack.c.bf16 %v146_v3, %v145_v2 }
  0x30   :  { %699 = vmatprep.subr.bf16.mxu1 %v698_v16 }
  0x32   :  { %669 = vmatpush3.bf16.msra.mxu0 %v668_v22  ;;  %v449_v22 = vld [vmem:[%s1154_s2] ss:$0 sm:$0xff] }
  0x33   :  { %701 = vmatpush3.bf16.msra.mxu1 %v700_v25  ;;  %671 = vmatprep.subr.bf16.mxu0 %v670_v26 }
  0x34   :  { %703 = vmatprep.subr.bf16.mxu1 %v702_v30 }
  0x36   :  { %673 = vmatpush3.bf16.msra.mxu0 %v672_v36 }
  0x37   :  { %705 = vmatpush3.bf16.msra.mxu1 %v704_v37  ;;  %675 = vmatprep.subr.bf16.mxu0 %v674_v38 }
  0x38   :  { %707 = vmatprep.subr.bf16.mxu1 %v706_v42 }
  0x3a   :  { %677 = vmatpush3.bf16.msra.mxu0 %v676_v48 }
  0x3b   :  { %709 = vmatpush3.bf16.msra.mxu1 %v708_v49  ;;  %679 = vmatprep.subr.bf16.mxu0 %v678_v50 }
  0x3c   :  { %711 = vmatprep.subr.bf16.mxu1 %v710_v54 }
  0x3e   :  { %681 = vmatpush3.bf16.msra.mxu0 %v680_v60 }
  0x3f   :  { %713 = vmatpush3.bf16.msra.mxu1 %v712_v61  ;;  %683 = vmatprep.subr.bf16.mxu0 %v682_v62 }
  0x40   :  { %715 = vmatprep.subr.bf16.mxu1 %v714_v1 }
  0x42   :  { %685 = vmatpush3.bf16.msra.mxu0 %v684_v4 }
  0x43   :  { %717 = vmatpush3.bf16.msra.mxu1 %v716_v5 }
  0x45   :  { %368 = vmatmul.mubr.f32.vlgmr.msra.gmra.mrb[2].mxu0 %v31_v6 }
  0x46   :  { %438 = vmatmul.mubr.f32.vlgmr.msra.gmra.mrb[2].mxu1 %v33_v7 }
  0xf8   :  { %v482_v8 = vpop.f32.mrb[0].mxu0 }
  0xf9   :  { %v517_v9 = vpop.f32.mrb[0].mxu1  ;;  %v483_v10 = vpop.f32.mrb[1].mxu0 }
  0xfa   :  { %v484_v11 = vadd.f32 %v483_v10, %v482_v8  ;;  %v518_v12 = vpop.f32.mrb[1].mxu1 }
  0xfb   :  { %v519_v13 = vadd.f32 %v518_v12, %v517_v9 }
  0xfd   :  { %v300_v14 = vadd.f32 %v519_v13, %v484_v11 }
 0x118   :  { %v552_v15 = vpop.f32.mrb[2].mxu0 }
 0x119   :  { %v553_v16 = vpop.f32.mrb[3].mxu0  ;;  %v587_v17 = vpop.f32.mrb[2].mxu1 }
 0x11a   :  { %v554_v18 = vadd.f32 %v553_v16, %v552_v15  ;;  %v588_v19 = vpop.f32.mrb[3].mxu1 }
 0x11b   :  { %v589_v20 = vadd.f32 %v588_v19, %v587_v17 }
 0x11c   :  { %v370_v21 = vadd.f32 %v554_v18, %v300_v14 }
 0x11e   :  { %v440_v23 = vadd.f32 %v589_v20, %v370_v21 }
 0x120   :  { %v443_v24 = vadd.f32 %v449_v22, %v440_v23 }
 0x122   :  { %444 = vst [vmem:[%s1155_s3] sm:$0xff] %v443_v24 }

</bundles_post_ra>
